<compile_context>
chip_gen: v5e
topology: v5e:2x2
jax: 0.10.0
libtpu: 0.0.40
codegen_flags: <defaults>
</compile_context>

<pallas_src>
import jax
import jax.numpy as jnp
from jax import lax
from jax.experimental import pallas as pl
from jax.experimental.pallas import tpu as pltpu

NEG_SLOPE = 0.2
BN_EPS = 1e-5


def _round_up(v, m):
    return (v + m - 1) // m * m


def _leaky_relu(x):
    # negative_slope < 1  =>  leaky_relu(x) == max(x, slope * x)
    return jnp.maximum(x, NEG_SLOPE * x)


def _stats_kernel(x_ref, bn1_ref, w1_ref, stats_ref):
    """Per-core accumulation of per-feature sum / sum-sq of m = lrelu(bn1(x)) @ w1."""
    @pl.when(pl.program_id(1) == 0)
    def _():
        stats_ref[...] = jnp.zeros_like(stats_ref)

    x = x_ref[...].astype(jnp.float32)                            # upcast (f32 VPU)
    z = _leaky_relu(x * bn1_ref[0:1, :] + bn1_ref[1:2, :])        # fused BN1
    m = jnp.dot(z.astype(w1_ref.dtype), w1_ref[...],
                preferred_element_type=jnp.float32)               # (tm, cmid)

    # No row mask here: padded-row contribution is removed analytically in XLA.
    stats_ref[0:1, :] += jnp.sum(m, axis=0, keepdims=True)
    stats_ref[1:2, :] += jnp.sum(m * m, axis=0, keepdims=True)


def _fwd_kernel(x_ref, bn1_ref, w1_ref, bn2_ref, w2_ref, b2_ref, o_ref):
    x = x_ref[...].astype(jnp.float32)                            # upcast; f32 VPU path
    z = _leaky_relu(x * bn1_ref[0:1, :] + bn1_ref[1:2, :])        # BN1 + LeakyReLU
    # TODO(synk): dropout with p>0 would need pltpu.prng_* masking here; the
    #             module default dropout=0.0 is an exact identity.
    m = jnp.dot(z.astype(w1_ref.dtype), w1_ref[...],
                preferred_element_type=jnp.float32)               # Linear1 (b1 folded)
    h = _leaky_relu(m * bn2_ref[0:1, :] + bn2_ref[1:2, :])        # BN2 + LeakyReLU
    o_ref[...] = (jnp.dot(h.astype(w2_ref.dtype), w2_ref[...],
                          preferred_element_type=jnp.float32)
                  + b2_ref[...]).astype(o_ref.dtype)              # Linear2


def mlp_forward(x, params, *, tile_m=1024, matmul_dtype=jnp.bfloat16,
                stats_cores=2):
    """x: (N, in_channels). params: dict from init_params."""
    f32 = jnp.float32
    n, cin = x.shape
    cmid = params["w1"].shape[1]
    cout = params["w2"].shape[1]

    x32 = x.astype(f32)

    # ---- BN1: full-batch training stats over f32 x (biased var, like torch),
    #      folded to a single scale/shift FMA (cheap XLA reduce).
    mean1 = jnp.mean(x32, axis=0, keepdims=True)
    var1 = jnp.var(x32, axis=0, keepdims=True)
    scale1 = params["g1"].astype(f32) * lax.rsqrt(var1 + BN_EPS)
    shift1 = params["be1"].astype(f32) - mean1 * scale1
    bn1 = jnp.concatenate([scale1, shift1], axis=0)               # (2, cin) f32

    w1_c = params["w1"].astype(matmul_dtype)                      # (cin, cmid)
    w2_c = params["w2"].astype(matmul_dtype)                      # (cmid, cout)
    b2 = params["b2"].astype(f32)                                 # (1, cout)
    g2 = params["g2"].astype(f32)
    be2 = params["be2"].astype(f32)

    # ---- batch tiling (sublane granularity depends on packed dtype).
    sub = max(8, 32 // jnp.dtype(matmul_dtype).itemsize)          # 8 f32 / 16 bf16
    tm = _round_up(min(tile_m, _round_up(n, sub)), sub)
    ncores = max(1, int(stats_cores))
    tiles_per_core = pl.cdiv(pl.cdiv(n, tm), ncores)
    n_tiles = ncores * tiles_per_core
    n_p = n_tiles * tm
    n_pad = n_p - n

    # x streamed in matmul dtype (halves the dominant HBM stream when bf16);
    # no feature-lane padding anywhere.
    x_p = jnp.pad(x.astype(matmul_dtype), ((0, n_pad), (0, 0)))

    # ---- VMEM budget: double-buffered x/out tiles + resident params + headroom.
    # TODO(synk): if cmid/cout grow to the multi-K range, resident w1/w2 can
    #             blow this budget (esp. v7x, 64 MiB) -> fall back to tiling
    #             cmid/cout with an extra 'arbitrary' axis + f32 accumulator.
    wbytes = jnp.dtype(matmul_dtype).itemsize
    est = (2 * tm * cin * wbytes                 # x tiles (double-buffered)
           + 2 * tm * cout * 4                   # out tiles (double-buffered)
           + (w1_c.size + w2_c.size) * wbytes    # resident weights
           + (4 * cin + 4 * cmid + 2 * cout) * 4 # BN params / bias / stats
           + 2 * tm * cmid * 4)                  # m / h intermediates
    try:
        vmem_cap = pltpu.get_tpu_info().vmem_capacity_bytes
    except Exception:
        vmem_cap = 64 * 2**20                    # conservative (v7x-sized)
    vmem_limit = int(min(int(vmem_cap * 3 // 4), max(32 * 2**20, 2 * est)))

    # ---- Pass 1: per-core partial sum / sum-sq of m across batch tiles.
    #      Leading "parallel" core axis -> both v7x TensorCores participate.
    partials = pl.pallas_call(
        _stats_kernel,
        out_shape=jax.ShapeDtypeStruct((ncores, 2, cmid), f32),
        grid=(ncores, tiles_per_core),
        in_specs=[
            pl.BlockSpec((tm, cin), lambda c, i: (c * tiles_per_core + i, 0)),
            pl.BlockSpec((2, cin), lambda c, i: (0, 0)),
            pl.BlockSpec((cin, cmid), lambda c, i: (0, 0)),
        ],
        out_specs=pl.BlockSpec((None, 2, cmid), lambda c, i: (c, 0, 0)),
        compiler_params=pltpu.CompilerParams(
            dimension_semantics=("parallel", "arbitrary"),
            vmem_limit_bytes=vmem_limit),
    )(x_p, bn1, w1_c)

    stats = jnp.sum(partials, axis=0)                             # (2, cmid)

    # Remove the analytically-known contribution of the zero-padded batch rows
    # (each padded row of x is exactly 0 -> z_pad = lrelu(shift1), identical
    # for every padded row), instead of masking inside the hot loop.
    if n_pad:
        z_pad = _leaky_relu(shift1)                               # (1, cin) f32
        m_pad = jnp.dot(z_pad.astype(matmul_dtype), w1_c,
                        preferred_element_type=f32)               # (1, cmid)
        stats = stats - jnp.concatenate(
            [n_pad * m_pad, n_pad * (m_pad * m_pad)], axis=0)

    # BN2 fused scale/shift from full-batch stats. Linear1's bias is exactly
    # cancelled by BN2's mean subtraction in training mode -> b1 never enters.
    mean_m = stats[0:1, :] / n
    var_m = jnp.maximum(stats[1:2, :] / n - mean_m * mean_m, 0.0)
    # TODO(synk): E[m^2]-mean^2 is cancellation-prone if |mean| >> std; use a
    #             shifted sum-of-squares if BN accuracy matters at large batch.
    scale2 = g2 * lax.rsqrt(var_m + BN_EPS)
    shift2 = be2 - mean_m * scale2
    bn2 = jnp.concatenate([scale2, shift2], axis=0)               # (2, cmid)

    # ---- Pass 2: full forward, batch-parallel grid, outputs at real cout
    #      width (no lane padding of the writeback).
    # TODO(synk): when cmid <= ~cin/2 or Linear1 turns MXU-bound, write m to
    #             HBM in pass 1 and consume it here instead of recomputing
    #             z@w1; for small shapes the recompute is the right trade.
    out_p = pl.pallas_call(
        _fwd_kernel,
        out_shape=jax.ShapeDtypeStruct((n_p, cout), f32),
        grid=(n_tiles,),
        in_specs=[
            pl.BlockSpec((tm, cin), lambda i: (i, 0)),
            pl.BlockSpec((2, cin), lambda i: (0, 0)),
            pl.BlockSpec((cin, cmid), lambda i: (0, 0)),
            pl.BlockSpec((2, cmid), lambda i: (0, 0)),
            pl.BlockSpec((cmid, cout), lambda i: (0, 0)),
            pl.BlockSpec((1, cout), lambda i: (0, 0)),
        ],
        out_specs=pl.BlockSpec((tm, cout), lambda i: (i, 0)),
        compiler_params=pltpu.CompilerParams(
            dimension_semantics=("parallel",),
            vmem_limit_bytes=vmem_limit),
    )(x_p, bn1, w1_c, bn2, w2_c, b2)

    return out_p[:n, :]


def init_params(key, in_channels, mid_channels, out_channels):
    """Deterministic synthetic parameters matching the PyTorch module shapes.

    Linear weights stored as (fan_in, fan_out) so the kernel computes x @ W + b
    (equivalent to PyTorch's x @ W.T + b). Per-channel vectors kept 2-D (1, C).
    b1 is kept for fidelity but is exactly cancelled by the training-mode
    BatchNorm that follows Linear1, so the kernel folds it away.
    """
    ks = jax.random.split(key, 8)
    lim1 = 1.0 / jnp.sqrt(in_channels)
    lim2 = 1.0 / jnp.sqrt(mid_channels)
    return {
        "g1": jax.random.uniform(ks[0], (1, in_channels), jnp.float32, 0.5, 1.5),
        "be1": jax.random.normal(ks[1], (1, in_channels), jnp.float32) * 0.1,
        "w1": jax.random.uniform(ks[2], (in_channels, mid_channels), jnp.float32,
                                 -lim1, lim1),
        "b1": jax.random.uniform(ks[3], (1, mid_channels), jnp.float32,
                                 -lim1, lim1),
        "g2": jax.random.uniform(ks[4], (1, mid_channels), jnp.float32, 0.5, 1.5),
        "be2": jax.random.normal(ks[5], (1, mid_channels), jnp.float32) * 0.1,
        "w2": jax.random.uniform(ks[6], (mid_channels, out_channels), jnp.float32,
                                 -lim2, lim2),
        "b2": jax.random.uniform(ks[7], (1, out_channels), jnp.float32,
                                 -lim2, lim2),
    }


if __name__ == "__main__":
    # MLP(in_channels=32, mid_channels=64, out_channels=16, batch_norm=True,
    #     dropout=0.0, bias=True), training-mode forward.
    # batch=20 with tile_m=8 -> multiple batch tiles across the 2-way stats
    # split (exercises cross-tile/cross-core BN stats) plus padded rows
    # (exercises the analytic pad-row correction).
    batch, in_ch, mid_ch, out_ch = 20, 32, 64, 16

    key = jax.random.PRNGKey(0)
    k_x, k_p = jax.random.split(key)
    x = jax.random.normal(k_x, (batch, in_ch), jnp.float32)
    params = init_params(k_p, in_ch, mid_ch, out_ch)

    # Pure-JAX reference of the same training-mode forward semantics.
    def ref(x, p):
        def bn(h, g, b):
            m = h.mean(0, keepdims=True)
            v = ((h - m) ** 2).mean(0, keepdims=True)
            return (h - m) / jnp.sqrt(v + BN_EPS) * g + b
        def lrelu(h):
            return jnp.where(h >= 0, h, NEG_SLOPE * h)
        h = lrelu(bn(x, p["g1"], p["be1"]))
        h = h @ p["w1"] + p["b1"]
        h = lrelu(bn(h, p["g2"], p["be2"]))
        return h @ p["w2"] + p["b2"]

    expected = ref(x, params)

    # f32-matmul / f32-stream path: tight tolerance (structural correctness).
    out_f32 = mlp_forward(x, params, tile_m=8, matmul_dtype=jnp.float32)
    jax.block_until_ready(out_f32)
    assert out_f32.shape == (batch, out_ch), out_f32.shape
    assert jnp.allclose(out_f32, expected, atol=1e-4, rtol=1e-4)

    # bf16 stream + bf16 MXU-operand path (f32 accumulation): looser tolerance
    # for bf16 operand/stream rounding.
    out_bf16 = mlp_forward(x, params, tile_m=8, matmul_dtype=jnp.bfloat16)
    jax.block_until_ready(out_bf16)
    assert out_bf16.shape == (batch, out_ch), out_bf16.shape
    assert jnp.allclose(out_bf16, expected, atol=1e-1, rtol=1e-1)

    print("KERNEL_OK")
</pallas_src>

<mosaic_0001>
module attributes {stable_mosaic.version = 11 : i64} {
  func.func @_stats_kernel(%arg0: i32, %arg1: i32, %arg2: memref<8x32xf32, #tpu.memory_space<vmem>>, %arg3: memref<2x32xf32, #tpu.memory_space<vmem>>, %arg4: memref<32x64xf32, #tpu.memory_space<vmem>>, %arg5: memref<1x2x64xf32, #tpu.memory_space<vmem>>) attributes {dimension_semantics = [#tpu.dimension_semantics<parallel>, #tpu.dimension_semantics<arbitrary>], iteration_bounds = array<i64: 2, 2>, scalar_prefetch = 0 : i64, scratch_operands = 0 : i64, tpu.core_type = #tpu.core_type<tc>, window_params = [{transform_indices = @transform_0, window_bounds = array<i64: 8, 32>}, {pipeline_mode = #tpu.pipeline_mode<synchronous>, transform_indices = @transform_1, window_bounds = array<i64: 2, 32>}, {pipeline_mode = #tpu.pipeline_mode<synchronous>, transform_indices = @transform_2, window_bounds = array<i64: 32, 64>}, {transform_indices = @transform_3, window_bounds = array<i64: 1, 2, 64>}]} {
    %c0_i32 = arith.constant 0 : i32
    %0 = arith.cmpi eq, %arg1, %c0_i32 : i32
    %1 = arith.extui %0 : i1 to i32
    %c0_i32_0 = arith.constant 0 : i32
    %2 = arith.cmpi ne, %1, %c0_i32_0 : i32
    scf.if %2 {
      %cst_22 = arith.constant 0.000000e+00 : f32
      %32 = vector.broadcast %cst_22 : f32 to vector<2x64xf32>
      %c0_23 = arith.constant 0 : index
      %c0_24 = arith.constant 0 : index
      %c0_25 = arith.constant 0 : index
      %33 = vector.load %arg5[%c0_23, %c0_24, %c0_25] : memref<1x2x64xf32, #tpu.memory_space<vmem>>, vector<1x2x64xf32>
      %34 = vector.shape_cast %33 : vector<1x2x64xf32> to vector<2x64xf32>
      %35 = vector.shape_cast %32 : vector<2x64xf32> to vector<1x2x64xf32>
      tpu.vector_store %arg5[%c0_23, %c0_24, %c0_25], %35 {strides = array<i32>} : memref<1x2x64xf32, #tpu.memory_space<vmem>>, vector<1x2x64xf32>,
    } else {
    }
    %c0 = arith.constant 0 : index
    %c0_1 = arith.constant 0 : index
    %3 = vector.load %arg2[%c0, %c0_1] : memref<8x32xf32, #tpu.memory_space<vmem>>, vector<8x32xf32>
    %c0_2 = arith.constant 0 : index
    %c0_3 = arith.constant 0 : index
    %4 = vector.load %arg3[%c0_2, %c0_3] : memref<2x32xf32, #tpu.memory_space<vmem>>, vector<1x32xf32>
    %5 = vector.broadcast %4 : vector<1x32xf32> to vector<8x32xf32>
    %6 = arith.mulf %3, %5 : vector<8x32xf32>
    %c1 = arith.constant 1 : index
    %c0_4 = arith.constant 0 : index
    %7 = vector.load %arg3[%c1, %c0_4] : memref<2x32xf32, #tpu.memory_space<vmem>>, vector<1x32xf32>
    %8 = vector.broadcast %7 : vector<1x32xf32> to vector<8x32xf32>
    %9 = arith.addf %6, %8 : vector<8x32xf32>
    %cst = arith.constant 2.000000e-01 : f32
    %10 = vector.broadcast %cst : f32 to vector<8x32xf32>
    %11 = arith.mulf %10, %9 : vector<8x32xf32>
    %12 = arith.maximumf %9, %11 : vector<8x32xf32>
    %c0_5 = arith.constant 0 : index
    %c0_6 = arith.constant 0 : index
    %13 = vector.load %arg4[%c0_5, %c0_6] : memref<32x64xf32, #tpu.memory_space<vmem>>, vector<32x64xf32>
    %cst_7 = arith.constant dense<0.000000e+00> : vector<8x64xf32>
    %14 = tpu.matmul %12, %13, %cst_7 {dimension_numbers = #tpu.dot_dimension_numbers<[1], [0], [0], [1], [0, 0, 1, 1], [], []>} : vector<8x32xf32>, vector<32x64xf32>, vector<8x64xf32> -> vector<8x64xf32>
    %c0_8 = arith.constant 0 : index
    %c0_9 = arith.constant 0 : index
    %c0_10 = arith.constant 0 : index
    %15 = vector.load %arg5[%c0_8, %c0_9, %c0_10] : memref<1x2x64xf32, #tpu.memory_space<vmem>>, vector<1x1x64xf32>
    %16 = vector.shape_cast %15 : vector<1x1x64xf32> to vector<1x64xf32>
    %cst_11 = arith.constant dense<0.000000e+00> : vector<64xf32>
    %17 = vector.multi_reduction <add>, %14, %cst_11 [0] : vector<8x64xf32> to vector<64xf32>
    %18 = vector.shape_cast %17 : vector<64xf32> to vector<1x64xf32>
    %19 = arith.addf %16, %18 : vector<1x64xf32>
    %c0_12 = arith.constant 0 : index
    %c0_13 = arith.constant 0 : index
    %c0_14 = arith.constant 0 : index
    %20 = vector.load %arg5[%c0_12, %c0_13, %c0_14] : memref<1x2x64xf32, #tpu.memory_space<vmem>>, vector<1x1x64xf32>
    %21 = vector.shape_cast %20 : vector<1x1x64xf32> to vector<1x64xf32>
    %22 = vector.shape_cast %19 : vector<1x64xf32> to vector<1x1x64xf32>
    tpu.vector_store %arg5[%c0_12, %c0_13, %c0_14], %22 {strides = array<i32>} : memref<1x2x64xf32, #tpu.memory_space<vmem>>, vector<1x1x64xf32>,
    %c0_15 = arith.constant 0 : index
    %c1_16 = arith.constant 1 : index
    %c0_17 = arith.constant 0 : index
    %23 = vector.load %arg5[%c0_15, %c1_16, %c0_17] : memref<1x2x64xf32, #tpu.memory_space<vmem>>, vector<1x1x64xf32>
    %24 = vector.shape_cast %23 : vector<1x1x64xf32> to vector<1x64xf32>
    %25 = arith.mulf %14, %14 : vector<8x64xf32>
    %cst_18 = arith.constant dense<0.000000e+00> : vector<64xf32>
    %26 = vector.multi_reduction <add>, %25, %cst_18 [0] : vector<8x64xf32> to vector<64xf32>
    %27 = vector.shape_cast %26 : vector<64xf32> to vector<1x64xf32>
    %28 = arith.addf %24, %27 : vector<1x64xf32>
    %c0_19 = arith.constant 0 : index
    %c1_20 = arith.constant 1 : index
    %c0_21 = arith.constant 0 : index
    %29 = vector.load %arg5[%c0_19, %c1_20, %c0_21] : memref<1x2x64xf32, #tpu.memory_space<vmem>>, vector<1x1x64xf32>
    %30 = vector.shape_cast %29 : vector<1x1x64xf32> to vector<1x64xf32>
    %31 = vector.shape_cast %28 : vector<1x64xf32> to vector<1x1x64xf32>
    tpu.vector_store %arg5[%c0_19, %c1_20, %c0_21], %31 {strides = array<i32>} : memref<1x2x64xf32, #tpu.memory_space<vmem>>, vector<1x1x64xf32>,
    return
  }
  func.func @transform_0(%arg0: i32, %arg1: i32) -> (i32, i32) {
    %c2_i32 = arith.constant 2 : i32
    %0 = arith.muli %arg0, %c2_i32 : i32
    %1 = arith.addi %0, %arg1 : i32
    %c0_i32 = arith.constant 0 : i32
    %c0_i32_0 = arith.constant 0 : i32
    return %1, %c0_i32 : i32, i32
  }
  func.func @transform_1(%arg0: i32, %arg1: i32) -> (i32, i32) {
    %c0_i32 = arith.constant 0 : i32
    %c0_i32_0 = arith.constant 0 : i32
    %c0_i32_1 = arith.constant 0 : i32
    return %c0_i32, %c0_i32_0 : i32, i32
  }
  func.func @transform_2(%arg0: i32, %arg1: i32) -> (i32, i32) {
    %c0_i32 = arith.constant 0 : i32
    %c0_i32_0 = arith.constant 0 : i32
    %c0_i32_1 = arith.constant 0 : i32
    return %c0_i32, %c0_i32_0 : i32, i32
  }
  func.func @transform_3(%arg0: i32, %arg1: i32) -> (i32, i32, i32) {
    %c0_i32 = arith.constant 0 : i32
    %c0_i32_0 = arith.constant 0 : i32
    %c0_i32_1 = arith.constant 0 : i32
    return %arg0, %c0_i32, %c0_i32_0 : i32, i32, i32
  }
}

</mosaic_0001>

<bundles_post_ra>
// kernel: tpu_custom_call.1
= control target key start
LH: loop header
LB: loop body
LE: loop exit
PB: predicated region body
PF: predicated region fallthrough
CT: control target
= control target key end

     0   :  { %s1025_s0 = inlined_call_operand.hbm [shape: f32[32,32], index: 0, kind: input, shape index: {}]   ;;  %s1026_s1 = inlined_call_operand.hbm [shape: f32[2,32], index: 1, kind: input, shape index: {}]   ;;  %s1027_s2 = inlined_call_operand.hbm [shape: f32[32,64], index: 2, kind: input, shape index: {}]   ;;  %s1028_s3 = inlined_call_operand.hbm [shape: f32[2,2,64], index: 3, kind: output, shape index: {}]  }
   0x1   :  { %1035 = sst [smem:[#allocation18_spill]] %s1026_s1 }
   0x2   :  { %1036 = sst [smem:[#allocation19_spill]] %s1027_s2 }
   0x3   :  { %1037 = sst [smem:[#allocation20_spill]] %s1028_s3 }
   0x4   :  { %8 = vsyncpa [#allocation3], 0 }
   0x5   :  { %10 = vsyncpa [#allocation3 + $0x1], 0 }
   0x6   :  { %11 = vsyncpa [#allocation6], 0 }
   0x7   :  { %12 = vsyncpa [#allocation4], 0 }
   0x8   :  { %14 = vsyncpa [#allocation4 + $0x1], 0  ;;  %s816_s12 = smov 0   ;;  %s818_s13 = smov 0  }
   0x9   :  { %s820_s14 = smov 0   ;;  %s822_s15 = smov 0  }
   0xa   :  { %s824_s16 = smov 0   ;;  %s826_s17 = smov 0  }
   0xb   :  { %s828_s18 = smov 0   ;;  %s830_s19 = smov 0  }
   0xc   :  { %s832_s20 = smov 0   ;;  %s834_s21 = smov 0  }
   0xd   :  { %s836_s22 = smov 0  }
   0xe LB: > { %1038 = sst [smem:[#allocation12_spill]] %s749_s12  ;;  %s423_s23 = sadd.s32 4294967295, %s789_s22   ;;  %s789_s22 = sphi %s836_s22, %s20_s22   ;;  %s785_s21 = sphi %s834_s21, %s1068_s21   ;;  %s781_s20 = sphi %s832_s20, %s1067_s20   ;;  %s777_s19 = sphi %s830_s19, %s1066_s19   ;;  %s773_s18 = sphi %s828_s18, %s1059_s18   ;;  %s769_s17 = sphi %s826_s17, %s1065_s17   ;;  %s765_s16 = sphi %s824_s16, %s1064_s16   ;;  %s761_s15 = sphi %s822_s15, %s1063_s15   ;;  %s757_s14 = sphi %s820_s14, %s1062_s14   ;;  %s753_s13 = sphi %s818_s13, %s1061_s13   ;;  %s749_s12 = sphi %s816_s12, %s1060_s12  }
   0xf   : > { %1039 = sst [smem:[#allocation13_spill]] %s773_s18  ;;  %s424_s24 = sadd.s32 4294967294, %s789_s22  }
  0x10   : > { %1040 = sst [smem:[#allocation14_spill]] %s777_s19  ;;  %p56_p0 = scmp.ne.s32.totalorder %s765_s16, %s761_s15 }
  0x11   : > { %1041 = sst [smem:[#allocation15_spill]] %s781_s20  ;;  %p872_p1 = scmp.eq.s32.totalorder %s423_s23, 0 }
  0x12   : > { %p121_p2 = scmp.ne.s32.totalorder %s757_s14, %s753_s13  ;;  %p122_p4 = scmp.eq.s32.totalorder %s423_s23, 3 }
  0x13   : > { %p881_p3 = por %p872_p1, %p56_p0  ;;  %p127_p5 = scmp.ne.s32.totalorder %s753_s13, %s749_s12 }
  0x14   : > { %p128_p6 = scmp.eq.s32.totalorder %s424_s24, 3  ;;  %p887_p7 = por %p122_p4, %p121_p2 }
  0x15   : > { %p427_p8 = scmp.ge.s32.totalorder %s789_s22, 1  ;;  %p135_p10 = scmp.lt.s32.totalorder %s789_s22, 5 }
  0x16   : > { %s1044_s28 = scalar_select %p887_p7, 1, 0 }
  0x17   : > { %p892_p9 = por %p128_p6, %p127_p5  ;;  %s1048_s1 = sld [smem:[#allocation18_spill]] }
  0x18   : > { %1045 = sst [smem:[#allocation16_spill]] %s1044_s28  ;;  %p900_p11 = pnand %p427_p8, %p135_p10 }
  0x19   : > { %s1046_s29 = scalar_select %p892_p9, 1, 0 }
  0x1a   : > { %p457_p12 = pneg %p900_p11  ;;  %s791_s7 = smov [#allocation5]  }
  0x1b   : > { %1047 = sst [smem:[#allocation17_spill]] %s1046_s29  ;;  %s149_s8 = sshll.u32 %s791_s7, 4  ;;  %s150_s8 = int_to_ptr.vmem [resolvable:$true] %s149_s8 }
  0x1c   : > { %s1050_s2 = sld [smem:[#allocation19_spill]]  ;;  %p458_p13 = pnand %p457_p12, %p872_p1 }
  0x1d   : > { %s147_s5 = sshll.u32 %s1048_s1, 4  ;;  %s792_s15 = smov [#allocation7]   ;;  %s148_s5 = int_to_ptr.hbm [resolvable:$true] %s147_s5 }
  0x1e   : > { %s160_s23 = sshll.u32 %s792_s15, 4  ;;  %s793_s24 = smov 128   ;;  %s161_s23 = int_to_ptr.vmem [resolvable:$true] %s160_s23 }
  0x1f   : > { %460 = dma.hbm_to_vmem [thread:$0]  (!%p458_p13), %s148_s5, 32, %s150_s8, [#allocation6]  }
  0x20   : > { %s794_s30 = smov 8   ;;  %s29_s4 = sadd.s32 1, %s781_s20 }
  0x21   : > { %s32_s7 = sadd.s32 1, %s785_s21  ;;  %p30_p0 = scmp.ge.s32.totalorder %s29_s4, 2 }
  0x22   : > { %s158_s11 = sshll.u32 %s1050_s2, 4  ;;  %s425_s9 = sshll.u32 %s785_s21, 1  ;;  %s159_s11 = int_to_ptr.hbm [resolvable:$true] %s158_s11 }
  0x23   : > { %463 = dma.hbm_to_vmem [thread:$0]  (!%p458_p13), %s159_s11, 512, %s161_s23, [#allocation6], %s793_s24, %s793_s24, %s794_s30  }
  0x24   : > { %s37_s10 = sadd.s32 %s781_s20, %s425_s9  ;;  %s43_s26 = sadd.s32 1, %s769_s17 }
  0x25   : > { %s1070_s4 = smov (%p30_p0, %s29_s4), 0  ;;  %s1072_s7 = smov (!%p30_p0, %s32_s7), %s785_s21 }
  0x26   : > { %p50_p2 = scmp.ne.s32.totalorder %s769_s17, %s765_s16  ;;  %p51_p4 = scmp.eq.s32.totalorder %s789_s22, 0 }
  0x27   : > { %p34_p5 = scmp.ge.s32.totalorder %s1072_s7, 2  ;;  %p474_p6 = scmp.lt.s32.totalorder %s789_s22, 4 }
  0x28   : > { %p923_p8 = por %p51_p4, %p50_p2  ;;  %s174_s8 = sand.u32 1, %s769_s17  }
  0x29   : > { %s1074_s7 = smov (%p34_p5, %s1072_s7), 0  ;;  %s431_s11 = sshll.u32 %s174_s8, 3 }
  0x2a   : > { %s426_s15 = sshll.u32 %s1074_s7, 1  ;;  %s108_s23 = ssub.s32 %s785_s21, %s1074_s7 }
  0x2b   : > { %s39_s24 = sadd.s32 %s426_s15, %s1070_s4  ;;  %p109_p10 = scmp.eq.s32.totalorder %s108_s23, 0 }
  0x2c   : > { %s40_s30 = ssub.s32 %s37_s10, %s39_s24  ;;  %s433_s9 = sshll.u32 %s37_s10, 3 }
  0x2d   : > { %p41_p12 = scmp.eq.s32.totalorder %s40_s30, 0  ;;  %s1052_s1 = sadd.s32 1, %s757_s14 }
  0x2e   : > { %s937_s2 = scalar_select %p109_p10, %s757_s14, %s1052_s1  }
  0x2f   : > { %s940_s20 = scalar_select %p41_p12, %s769_s17, %s43_s26  }
  0x30   : > { %s184_s28 = scalar_lea.hbm %s1025_s0, %s433_s9  ;;  %s178_s3 = scalar_lea.vmem [#allocation2], %s431_s11 }
  0x31   : > { %s188_s19 = sshll.u32 %s178_s3, 4  ;;  %s186_s18 = sshll.u32 %s184_s28, 4  ;;  %s189_s19 = int_to_ptr.vmem [resolvable:$true] %s188_s19  ;;  %s187_s18 = int_to_ptr.hbm [resolvable:$true] %s186_s18 }
  0x32   : > { %p465_p13 = pnand %p474_p6, %p923_p8  ;;  %s175_s15 = scalar_lea.sflag [#allocation3], %s174_s8 }
  0x33   : > { %197 = sbr.rel (%p900_p11) target bundleno = 230 (0xe6), region = 32  ;;  %s199_s1 = sand.u32 (!%p900_p11), 1, %s765_s16  }
  0x34   : > { %467 = dma.hbm_to_vmem [thread:$0]  (!%p465_p13), %s187_s18, 128, %s189_s19, %s175_s15  }
  0x35   : > { %s435_s26 = sshll.u32 (!%p900_p11), %s199_s1, 3  ;;  %s200_s10 = scalar_lea.sflag (!%p900_p11), [#allocation3], %s199_s1 }
  0x36   : > { %s203_s12 = scalar_lea.vmem (!%p900_p11), [#allocation2], %s435_s26 }
  0x38   : > { %736 = dma.done.wait (%p881_p3), %s200_s10, 128  }
  0x39   : > { %738 = vsyncadd (%p881_p3), %s200_s10, 4294967168 }
  0x3a   : > { %740 = dma.done.wait (%p872_p1), [#allocation6], 544  }
  0x3b   : > { %742 = vsyncadd (%p872_p1), [#allocation6], 4294966752  ;;  %s234_s3 = sand.u32 1, %s753_s13   ;;  %s1053_s28 = sld [smem:[#allocation13_spill]] }
  0x3c   : > { %s438_s18 = sshll.u32 %s234_s3, 1 }
  0x3d   : > { %s963_s19 = scalar_lea.vmem [#allocation8], %s438_s18 }
  0x41   : > { %p439_p11 = scmp.ne.s32.totalorder %s1053_s28, 0 }
  0x43   : > { %242 = sbr.rel (%p439_p11) target bundleno = 74 (0x4a), region = 48 }
  0x48   : > { %vm243_vm0 = vcmask 517120   ;;  %v795_v0 = vmov 0.0  }
  0x49   : > { %244 = vst.msk [vmem:[%s963_s19] sm:$0x3] %vm243_vm0, %v795_v0 }
  0x4a PF: > { %v257_v1 = vld [vmem:[#allocation7 + $0x18] sm:$0xff]  ;;  %v256_v2 = vld [vmem:[#allocation7 + $0x10] sm:$0xff]  ;;  %v255_v3 = vld [vmem:[#allocation7 + $0x8] sm:$0xff]  ;;  %s1054_s25 = sld [smem:[#allocation14_spill]]  ;;  %vm258_vm1 = vcmask 261120   ;;  %vm283_vm2 = vcmask 523264  }
  0x4b   : > { %274 = vmatpush.msra.mxu0 %v257_v1  ;;  %v245_v4 = vld [vmem:[%s203_s12] sm:$0xff]  ;;  %v571_v5 = vld [vmem:[#allocation5] ss:$0 sm:$0xff]  ;;  %v572_v6 = vld [vmem:[#allocation5 + $0x1] ss:$0 sm:$0xff]  ;;  %s1055_s5 = sld [smem:[#allocation20_spill]] }
  0x4c   : > { %v254_v7 = vld [vmem:[#allocation7] sm:$0xff]  ;;  %v248_v8 = vmul.f32 %v571_v5, %v245_v4  ;;  %vm292_vm3 = vcmask 516096   ;;  %s318_s23 = sshll.u32 %s963_s19, 4  ;;  %s306_s30 = scalar_lea.sflag [#allocation4], %s234_s3  ;;  %s319_s23 = int_to_ptr.vmem [resolvable:$true] %s318_s23 }
  0x4d   : > { %275 = vmatpush.msra.mxu0 %v256_v2 }
  0x4e   : > { %v251_v9 = vadd.f32 %v572_v6, %v248_v8 }
  0x4f   : > { %276 = vmatpush.msra.mxu0 %v255_v3 }
  0x50   : > { %v252_v10 = vmul.f32 0.2, %v251_v9  ;;  %s442_s27 = sshll.u32 %s1054_s25, 1  ;;  %v282_v25 = vld [vmem:[%s963_s19] sm:$0x1] }
  0x51   : > { %277 = vmatpush.msra.mxu0 %v254_v7  ;;  %s316_s8 = scalar_lea.hbm %s1055_s5, %s442_s27  ;;  %v294_v28 = vld [vmem:[%s963_s19 + $0x1] sm:$0x1]  ;;  %s683_s10 = scalar_lea.hbm %s1055_s5, 4 }
  0x52   : > { %v253_v11 = vmax.f32 %v251_v9, %v252_v10  ;;  %s320_s24 = sshll.u32 %s316_s8, 4  ;;  %s321_s24 = int_to_ptr.hbm [resolvable:$true] %s320_s24 }
  0x53   : > { %s677_s9 = sshra.s32 %s321_s24, 4  ;;  %s678_s9 = int_to_ptr.hbm [resolvable:$true] %s677_s9 }
  0x54   : > { %440 = vmatmul.msk.f32.vlgmr.msra.gmra.mxu0 %vm258_vm1, %v253_v11  ;;  %s679_s15 = scalar_lea.hbm %s678_s9, 2  ;;  %p684_p2 = scmp.lt.s32.totalorder %s678_s9, %s1055_s5 }
  0x55   : > { %p680_p1 = scmp.ne.s32.totalorder %s678_s9, %s679_s15  ;;  %p685_p4 = scmp.lt.s32.totalorder %s683_s10, %s679_s15 }
  0x57   : > { %p681_p3 = pnand %p680_p1, %p887_p7  ;;  %p686_p5 = por %p685_p4, %p684_p2 }
  0x59   : > { %p682_p0 = pneg %p681_p3 }
  0x5b   : > { %p687_p6 = pnand %p686_p5, %p682_p0 }
  0xd1   : > { %v279_v12 = vpop.f32.mrf.mxu0 }
  0xd2   : > { %v284_v13 = vsel %vm283_vm2, %v279_v12, 0.0  ;;  %v295_v14 = vmul.f32 %v279_v12, %v279_v12 }
  0xd3   : > { %v285_v15 = vrot.slane %v284_v13, 4 }
  0xd4   : > { %v296_v16 = vsel %vm283_vm2, %v295_v14, 0.0 }
  0xd5   : > { %v286_v17 = vadd.f32 %v285_v15, %v284_v13  ;;  %v297_v18 = vrot.slane %v296_v16, 4 }
  0xd7   : > { %v287_v19 = vrot.slane %v286_v17, 2  ;;  %v298_v20 = vadd.f32 %v297_v18, %v296_v16 }
  0xd9   : > { %v288_v21 = vadd.f32 %v287_v19, %v286_v17  ;;  %v299_v22 = vrot.slane %v298_v20, 2 }
  0xdb   : > { %v289_v23 = vrot.slane %v288_v21, 1  ;;  %v300_v24 = vadd.f32 %v299_v22, %v298_v20 }
  0xdd   : > { %v290_v26 = vadd.f32 %v289_v23, %v288_v21  ;;  %v301_v27 = vrot.slane %v300_v24, 1 }
  0xdf   : > { %v291_v29 = vadd.f32 %v290_v26, %v282_v25  ;;  %v302_v30 = vadd.f32 %v301_v27, %v300_v24 }
  0xe1   : > { %293 = vst.msk [vmem:[%s963_s19] sm:$0x1] %vm292_vm3, %v291_v29  ;;  %v303_v31 = vadd.f32 %v302_v30, %v294_v28 }
  0xe3   : > { %304 = vst.msk [vmem:[%s963_s19 + $0x1] sm:$0x1] %vm292_vm3, %v303_v31 }
  0xe4   : > { %690 = shalt.err (!%p687_p6)
}
  0xe5   : > { %455 = dma.vmem_to_hbm [thread:$0]  (%p887_p7), %s319_s23, 32, %s321_s24, %s306_s30  }
  0xe6 PF: > { %s1057_s3 = sld [smem:[#allocation12_spill]]  ;;  %p477_p8 = scmp.ge.s32.totalorder %s789_s22, 2 }
  0xe8   : > { %p469_p10 = pnand %p477_p8, %p892_p9 }
  0xea   : > { %p470_p12 = pneg %p469_p10 }
  0xec   : > { %s332_s28 = sand.u32 1, %s1057_s3  }
  0xed   : > { %s333_s25 = scalar_lea.sflag [#allocation4], %s332_s28 }
  0xee   : > { %744 = dma.done.wait (%p470_p12), %s333_s25, 32  }
  0xef   : > { %746 = vsyncadd (%p470_p12), %s333_s25, 4294967264  ;;  %s20_s22 = sadd.s32 1, %s789_s22   ;;  %s1059_s18 = sld [smem:[#allocation15_spill]] }
  0xf0   : > { %p17_p13 = scmp.ge.s32.totalorder %s20_s22, 6   ;;  %s1060_s12 = smov %s753_s13 }
  0xf1   : > { %s1061_s13 = smov %s757_s14  ;;  %s1062_s14 = smov %s937_s2 }
  0xf2   : > { %s1063_s15 = smov %s765_s16  ;;  %s1064_s16 = smov %s769_s17 }
  0xf3   : > { %s1065_s17 = smov %s940_s20  ;;  %s1066_s19 = smov %s785_s21 }
  0xf4   : > { %s1067_s20 = smov %s1070_s4  ;;  %s1068_s21 = smov %s1074_s7 }
  0xf5   :  { %19 = sbr.rel (!%p17_p13) target bundleno = 14 (0xe), region = 89 }
  0xfa   :  { %339 = vsyncpa [#allocation3], 1 }
  0xfb   :  { %341 = vsyncpa [#allocation3 + $0x1], 1 }
  0xfc   :  { %342 = vsyncpa [#allocation6], 1 }
  0xfd   :  { %343 = vsyncpa [#allocation4], 1 }
  0xfe   :  { %345 = vsyncpa [#allocation4 + $0x1], 1 }

</bundles_post_ra>
